<compile_context>
chip_gen: v7x
topology: tpu7x:2x2x1
jax: 0.10.0
libtpu: 0.0.40
codegen_flags: <defaults>
</compile_context>

<pallas_src>
import functools

import jax
import jax.numpy as jnp
from jax import lax
from jax.experimental import pallas as pl
from jax.experimental.pallas import tpu as pltpu


def _round_up(x, m):
    return (x + m - 1) // m * m


def _bottleneck_kernel(x_ref, w_ref, b_ref, g_ref, beta_ref, o_ref,
                       *, batch_true, eps, use_bf16_matmul):
    # ---- Linear: y = x @ W.T + b -------------------------------------------
    x = x_ref[...]                      # (Bp, Kp) f32
    w = w_ref[...]                      # (tn, Kp) f32
    if use_bf16_matmul:
        # v6e / v7x: MXU peak is bf16; keep the f32 accumulate.
        x = x.astype(jnp.bfloat16)
        w = w.astype(jnp.bfloat16)
    # Contract last dim of both operands -> transpose folded into MXU issue,
    # no (tn,Kp)->(Kp,tn) relayout in VMEM.
    y = lax.dot_general(
        x, w,
        dimension_numbers=(((1,), (1,)), ((), ())),
        preferred_element_type=jnp.float32)          # (Bp, tn) f32
    y = y + b_ref[...]                                # broadcast (1, tn)

    # ---- BatchNorm1d (training-mode batch stats, biased variance) ----------
    b_pad = y.shape[0]
    inv_n = 1.0 / float(batch_true)
    if b_pad == batch_true:
        mean = jnp.sum(y, axis=0, keepdims=True) * inv_n
        diff = y - mean
        var = jnp.sum(diff * diff, axis=0, keepdims=True) * inv_n
    else:
        # Batch was padded to a sublane multiple: padded rows hold x=0 so
        # y=bias there; mask them out of the statistics (static batch_true).
        row_ids = lax.broadcasted_iota(jnp.int32, (b_pad, 1), 0)
        valid = row_ids < batch_true
        y_m = jnp.where(valid, y, 0.0)
        mean = jnp.sum(y_m, axis=0, keepdims=True) * inv_n
        diff = jnp.where(valid, y - mean, 0.0)
        var = jnp.sum(diff * diff, axis=0, keepdims=True) * inv_n

    inv_std = lax.rsqrt(var + eps)                    # f32 EUP path
    out = (y - mean) * (inv_std * g_ref[...]) + beta_ref[...]
    o_ref[...] = out.astype(o_ref.dtype)


def bottleneck_forward(x, w, b, gamma, beta, *, eps=1e-5, tile_n=128,
                       use_bf16_matmul=False):
    """x: (B, K), w: (D, K), b/gamma/beta: (D,) -> (B, D).

    Equivalent to BatchNorm1d(Linear(x)) in PyTorch training-mode forward.
    """
    B, K = x.shape
    D = w.shape[0]

    # Lane/sublane-aligned padded problem (zero padding keeps the math exact;
    # padded feature columns come out as 0 and are sliced off).
    Bp = _round_up(B, 8)
    Kp = _round_up(K, 128)
    Dp = _round_up(D, 128)
    tn = min(tile_n, Dp)
    if Dp % tn != 0:
        tn = 128  # Dp is always a multiple of 128

    x_p = jnp.pad(x, ((0, Bp - B), (0, Kp - K)))
    w_p = jnp.pad(w, ((0, Dp - D), (0, Kp - K)))
    b_p = jnp.pad(b.reshape(1, D), ((0, 0), (0, Dp - D)))
    g_p = jnp.pad(gamma.reshape(1, D), ((0, 0), (0, Dp - D)),
                  constant_values=1.0)
    beta_p = jnp.pad(beta.reshape(1, D), ((0, 0), (0, Dp - D)))

    kernel = functools.partial(
        _bottleneck_kernel, batch_true=B, eps=eps,
        use_bf16_matmul=use_bf16_matmul)

    out_p = pl.pallas_call(
        kernel,
        out_shape=jax.ShapeDtypeStruct((Bp, Dp), x.dtype),
        grid_spec=pltpu.PrefetchScalarGridSpec(
            num_scalar_prefetch=0,
            grid=(Dp // tn,),                       # tile over features; BN
            in_specs=[                              # stats are per-feature so
                pl.BlockSpec((Bp, Kp), lambda j: (0, 0)),   # tiles independent
                pl.BlockSpec((tn, Kp), lambda j: (j, 0)),
                pl.BlockSpec((1, tn), lambda j: (0, j)),
                pl.BlockSpec((1, tn), lambda j: (0, j)),
                pl.BlockSpec((1, tn), lambda j: (0, j)),
            ],
            out_specs=pl.BlockSpec((Bp, tn), lambda j: (0, j)),
        ),
        compiler_params=pltpu.CompilerParams(
            dimension_semantics=("parallel",),      # megacore-shardable on v7x
            vmem_limit_bytes=64 << 20,
        ),
    )(x_p, w_p, b_p, g_p, beta_p)

    return out_p[:B, :D]


if __name__ == "__main__":
    # Small shapes consistent with BottleNeck.forward: x (batch, in_features).
    batch = 8
    in_features = 32
    bottleneck_dim = 16

    key = jax.random.PRNGKey(0)
    kx, kw, kb, kg, kbeta = jax.random.split(key, 5)

    x = jax.random.normal(kx, (batch, in_features), dtype=jnp.float32)
    w = jax.random.normal(kw, (bottleneck_dim, in_features),
                          dtype=jnp.float32) * 0.1
    b = jax.random.normal(kb, (bottleneck_dim,), dtype=jnp.float32) * 0.1
    gamma = jax.random.normal(kg, (bottleneck_dim,), dtype=jnp.float32) * 0.1 + 1.0
    beta = jax.random.normal(kbeta, (bottleneck_dim,), dtype=jnp.float32) * 0.1

    out = bottleneck_forward(x, w, b, gamma, beta)
    out = jax.block_until_ready(out)

    # Pure-JAX reference: Linear + BatchNorm1d training-mode forward
    # (biased variance, eps=1e-5).
    y = x @ w.T + b
    mean = y.mean(axis=0)
    var = ((y - mean) ** 2).mean(axis=0)
    ref = (y - mean) / jnp.sqrt(var + 1e-5) * gamma + beta

    assert out.shape == (batch, bottleneck_dim)
    assert jnp.allclose(out, ref, atol=1e-4, rtol=1e-4), "mismatch vs reference"

    # TODO(synk): BatchNorm1d running_mean/running_var momentum updates are a
    # training side effect (not part of the forward output) and are not tracked.
    print("KERNEL_OK")
</pallas_src>

<mosaic_0001>
module attributes {stable_mosaic.version = 11 : i64} {
  func.func @_bottleneck_kernel(%arg0: i32, %arg1: memref<8x128xf32, #tpu.memory_space<vmem>>, %arg2: memref<128x128xf32, #tpu.memory_space<vmem>>, %arg3: memref<1x128xf32, #tpu.memory_space<vmem>>, %arg4: memref<1x128xf32, #tpu.memory_space<vmem>>, %arg5: memref<1x128xf32, #tpu.memory_space<vmem>>, %arg6: memref<8x128xf32, #tpu.memory_space<vmem>>) attributes {dimension_semantics = [#tpu.dimension_semantics<parallel>], iteration_bounds = array<i64: 1>, scalar_prefetch = 0 : i64, scratch_operands = 0 : i64, tpu.core_type = #tpu.core_type<tc>, window_params = [{pipeline_mode = #tpu.pipeline_mode<synchronous>, transform_indices = @transform_0, window_bounds = array<i64: 8, 128>}, {transform_indices = @transform_1, window_bounds = array<i64: 128, 128>}, {transform_indices = @transform_2, window_bounds = array<i64: 1, 128>}, {transform_indices = @transform_3, window_bounds = array<i64: 1, 128>}, {transform_indices = @transform_4, window_bounds = array<i64: 1, 128>}, {transform_indices = @transform_5, window_bounds = array<i64: 8, 128>}]} {
    %c0 = arith.constant 0 : index
    %c0_0 = arith.constant 0 : index
    %0 = vector.load %arg1[%c0, %c0_0] : memref<8x128xf32, #tpu.memory_space<vmem>>, vector<8x128xf32>
    %c0_1 = arith.constant 0 : index
    %c0_2 = arith.constant 0 : index
    %1 = vector.load %arg2[%c0_1, %c0_2] : memref<128x128xf32, #tpu.memory_space<vmem>>, vector<128x128xf32>
    %cst = arith.constant dense<0.000000e+00> : vector<8x128xf32>
    %2 = tpu.matmul %0, %1, %cst {dimension_numbers = #tpu.dot_dimension_numbers<[1], [1], [0], [0], [0, 0, 1, 0], [], []>} : vector<8x128xf32>, vector<128x128xf32>, vector<8x128xf32> -> vector<8x128xf32>
    %c0_3 = arith.constant 0 : index
    %c0_4 = arith.constant 0 : index
    %3 = vector.load %arg3[%c0_3, %c0_4] : memref<1x128xf32, #tpu.memory_space<vmem>>, vector<1x128xf32>
    %4 = vector.broadcast %3 : vector<1x128xf32> to vector<8x128xf32>
    %5 = arith.addf %2, %4 : vector<8x128xf32>
    %cst_5 = arith.constant dense<0.000000e+00> : vector<128xf32>
    %6 = vector.multi_reduction <add>, %5, %cst_5 [0] : vector<8x128xf32> to vector<128xf32>
    %7 = vector.shape_cast %6 : vector<128xf32> to vector<1x128xf32>
    %cst_6 = arith.constant 1.250000e-01 : f32
    %8 = vector.broadcast %cst_6 : f32 to vector<1x128xf32>
    %9 = arith.mulf %7, %8 : vector<1x128xf32>
    %10 = vector.broadcast %9 : vector<1x128xf32> to vector<8x128xf32>
    %11 = arith.subf %5, %10 : vector<8x128xf32>
    %12 = arith.mulf %11, %11 : vector<8x128xf32>
    %cst_7 = arith.constant dense<0.000000e+00> : vector<128xf32>
    %13 = vector.multi_reduction <add>, %12, %cst_7 [0] : vector<8x128xf32> to vector<128xf32>
    %14 = vector.shape_cast %13 : vector<128xf32> to vector<1x128xf32>
    %cst_8 = arith.constant 1.250000e-01 : f32
    %15 = vector.broadcast %cst_8 : f32 to vector<1x128xf32>
    %16 = arith.mulf %14, %15 : vector<1x128xf32>
    %cst_9 = arith.constant 9.99999974E-6 : f32
    %17 = vector.broadcast %cst_9 : f32 to vector<1x128xf32>
    %18 = arith.addf %16, %17 : vector<1x128xf32>
    %19 = math.rsqrt %18 : vector<1x128xf32>
    %20 = vector.broadcast %9 : vector<1x128xf32> to vector<8x128xf32>
    %21 = arith.subf %5, %20 : vector<8x128xf32>
    %c0_10 = arith.constant 0 : index
    %c0_11 = arith.constant 0 : index
    %22 = vector.load %arg4[%c0_10, %c0_11] : memref<1x128xf32, #tpu.memory_space<vmem>>, vector<1x128xf32>
    %23 = arith.mulf %19, %22 : vector<1x128xf32>
    %24 = vector.broadcast %23 : vector<1x128xf32> to vector<8x128xf32>
    %25 = arith.mulf %21, %24 : vector<8x128xf32>
    %c0_12 = arith.constant 0 : index
    %c0_13 = arith.constant 0 : index
    %26 = vector.load %arg5[%c0_12, %c0_13] : memref<1x128xf32, #tpu.memory_space<vmem>>, vector<1x128xf32>
    %27 = vector.broadcast %26 : vector<1x128xf32> to vector<8x128xf32>
    %28 = arith.addf %25, %27 : vector<8x128xf32>
    %c0_14 = arith.constant 0 : index
    %c0_15 = arith.constant 0 : index
    %29 = vector.load %arg6[%c0_14, %c0_15] : memref<8x128xf32, #tpu.memory_space<vmem>>, vector<8x128xf32>
    tpu.vector_store %arg6[%c0_14, %c0_15], %28 {strides = array<i32>} : memref<8x128xf32, #tpu.memory_space<vmem>>, vector<8x128xf32>,
    return
  }
  func.func @transform_0(%arg0: i32) -> (i32, i32) {
    %c0_i32 = arith.constant 0 : i32
    %c0_i32_0 = arith.constant 0 : i32
    %c0_i32_1 = arith.constant 0 : i32
    return %c0_i32, %c0_i32_0 : i32, i32
  }
  func.func @transform_1(%arg0: i32) -> (i32, i32) {
    %c0_i32 = arith.constant 0 : i32
    %c0_i32_0 = arith.constant 0 : i32
    return %arg0, %c0_i32 : i32, i32
  }
  func.func @transform_2(%arg0: i32) -> (i32, i32) {
    %c0_i32 = arith.constant 0 : i32
    %c0_i32_0 = arith.constant 0 : i32
    return %c0_i32, %arg0 : i32, i32
  }
  func.func @transform_3(%arg0: i32) -> (i32, i32) {
    %c0_i32 = arith.constant 0 : i32
    %c0_i32_0 = arith.constant 0 : i32
    return %c0_i32, %arg0 : i32, i32
  }
  func.func @transform_4(%arg0: i32) -> (i32, i32) {
    %c0_i32 = arith.constant 0 : i32
    %c0_i32_0 = arith.constant 0 : i32
    return %c0_i32, %arg0 : i32, i32
  }
  func.func @transform_5(%arg0: i32) -> (i32, i32) {
    %c0_i32 = arith.constant 0 : i32
    %c0_i32_0 = arith.constant 0 : i32
    return %c0_i32, %arg0 : i32, i32
  }
}

</mosaic_0001>

<bundles_post_ra>
// kernel: tpu_custom_call.1
= control target key start
LH: loop header
LB: loop body
LE: loop exit
PB: predicated region body
PF: predicated region fallthrough
CT: control target
= control target key end

     0   :  { %10 = vsyncpa [#allocation3], 0  ;;  %s570_s0 = inlined_call_operand.hbm [shape: f32[8,128], index: 0, kind: input, shape index: {}]   ;;  %s571_s1 = inlined_call_operand.hbm [shape: f32[128,128], index: 1, kind: input, shape index: {}]   ;;  %s572_s2 = inlined_call_operand.hbm [shape: f32[1,128], index: 2, kind: input, shape index: {}]   ;;  %s573_s3 = inlined_call_operand.hbm [shape: f32[1,128], index: 3, kind: input, shape index: {}]   ;;  %s574_s4 = inlined_call_operand.hbm [shape: f32[1,128], index: 4, kind: input, shape index: {}]   ;;  %s575_s5 = inlined_call_operand.hbm [shape: f32[8,128], index: 5, kind: output, shape index: {}]  }
   0x1   :  { %11 = vsyncpa [#allocation6], 0 }
   0x2   :  { %12 = vsyncpa [#allocation9], 0 }
   0x3   :  { %13 = vsyncpa [#allocation4], 0  ;;  %s457_s18 = smov [#allocation5]   ;;  %s317_s22 = scalar_lea.hbm %s571_s1, 2048 }
   0x4   :  { %s29_s19 = sshll.u32 %s457_s18, 4  ;;  %p318_p0 = scmp.ne.s32.totalorder %s571_s1, %s317_s22  ;;  %s30_s19 = int_to_ptr.vmem [resolvable:$true] %s29_s19 }
   0x5   :  { %p321_p1 = scmp.lt.u32.totalorder %s317_s22, %s571_s1 }
   0x7   :  { %p323_p2 = pnand %p321_p1, %p318_p0 }
   0x9   :  { %326 = shalt.err (!%p323_p2)
}
   0xa   :  { %s327_s27 = scalar_lea.vmem %s30_s19, 2048  ;;  %p332_p4 = scmp.lt.s32.totalorder %s30_s19, %s30_s19 }
   0xb   :  { %p328_p3 = scmp.ne.s32.totalorder %s30_s19, %s327_s27  ;;  %p333_p5 = scmp.lt.s32.totalorder %s327_s27, %s327_s27 }
   0xd   :  { %p334_p6 = por %p333_p5, %p332_p4 }
   0xf   :  { %p335_p7 = pnand %p334_p6, %p328_p3 }
  0x11   :  { %338 = shalt.err (!%p335_p7)
}
  0x12   :  { %s458_s28 = smov 128   ;;  %s459_s29 = smov 8  }
  0x13   :  { %35 = dma.hbm_to_vmem [thread:$0]  %s571_s1, 2048, %s30_s19, [#allocation6], %s458_s28, %s458_s28, %s459_s29  }
  0x14   :  { %s460_s7 = smov [#allocation8]   ;;  %s461_s9 = smov [#allocation2]  }
  0x15   :  { %s52_s8 = sshll.u32 %s460_s7, 4  ;;  %s20_s10 = sshll.u32 %s461_s9, 4  ;;  %s53_s8 = int_to_ptr.vmem [resolvable:$true] %s52_s8  ;;  %s21_s10 = int_to_ptr.vmem [resolvable:$true] %s20_s10 }
  0x16   :  { %s339_s13 = scalar_lea.hbm %s573_s3, 16 }
  0x17   :  { %p340_p8 = scmp.ne.s32.totalorder %s573_s3, %s339_s13  ;;  %p343_p9 = scmp.lt.u32.totalorder %s339_s13, %s573_s3 }
  0x19   :  { %p345_p10 = pnand %p343_p9, %p340_p8 }
  0x1b   :  { %348 = shalt.err (!%p345_p10)
}
  0x1c   :  { %s349_s1 = scalar_lea.vmem %s53_s8, 16  ;;  %s353_s18 = scalar_lea.vmem %s53_s8, 32 }
  0x1d   :  { %p350_p11 = scmp.ne.s32.totalorder %s53_s8, %s349_s1  ;;  %p354_p12 = scmp.lt.s32.totalorder %s53_s8, %s53_s8 }
  0x1e   :  { %p355_p13 = scmp.lt.s32.totalorder %s353_s18, %s349_s1 }
  0x20   :  { %p356_p0 = por %p355_p13, %p354_p12 }
  0x22   :  { %p357_p1 = pnand %p356_p0, %p350_p11 }
  0x24   :  { %360 = shalt.err (!%p357_p1)
}
  0x25   :  { %55 = dma.hbm_to_vmem [thread:$0]  %s573_s3, 16, %s53_s8, [#allocation9]  }
  0x26   :  { %s361_s23 = scalar_lea.hbm %s570_s0, 128 }
  0x27   :  { %p362_p2 = scmp.ne.s32.totalorder %s570_s0, %s361_s23  ;;  %p365_p3 = scmp.lt.u32.totalorder %s361_s23, %s570_s0 }
  0x29   :  { %p367_p4 = pnand %p365_p3, %p362_p2 }
  0x2b   :  { %370 = shalt.err (!%p367_p4)
}
  0x2c   :  { %s371_s28 = scalar_lea.vmem %s21_s10, 128  ;;  %p376_p6 = scmp.lt.s32.totalorder %s21_s10, %s21_s10 }
  0x2d   :  { %p372_p5 = scmp.ne.s32.totalorder %s21_s10, %s371_s28  ;;  %p377_p7 = scmp.lt.s32.totalorder %s371_s28, %s371_s28 }
  0x2f   :  { %p378_p8 = por %p377_p7, %p376_p6 }
  0x31   :  { %p379_p9 = pnand %p378_p8, %p372_p5 }
  0x33   :  { %382 = shalt.err (!%p379_p9)
}
  0x34   :  { %23 = dma.hbm_to_vmem [thread:$0]  %s570_s0, 128, %s21_s10, [#allocation3]  }
  0x35   :  { %s462_s30 = smov [#allocation7]   ;;  %s463_s7 = smov [#allocation10]  }
  0x36   :  { %s42_s6 = sshll.u32 %s462_s30, 4  ;;  %s62_s8 = sshll.u32 %s463_s7, 4  ;;  %s43_s6 = int_to_ptr.vmem [resolvable:$true] %s42_s6  ;;  %s63_s8 = int_to_ptr.vmem [resolvable:$true] %s62_s8 }
  0x37   :  { %s383_s12 = scalar_lea.hbm %s572_s2, 16 }
  0x38   :  { %p384_p10 = scmp.ne.s32.totalorder %s572_s2, %s383_s12  ;;  %p387_p11 = scmp.lt.u32.totalorder %s383_s12, %s572_s2 }
  0x3a   :  { %p389_p12 = pnand %p387_p11, %p384_p10 }
  0x3c   :  { %392 = shalt.err (!%p389_p12)
}
  0x3d   :  { %s393_s0 = scalar_lea.vmem %s43_s6, 16  ;;  %s397_s10 = scalar_lea.vmem %s43_s6, 32 }
  0x3e   :  { %p394_p13 = scmp.ne.s32.totalorder %s43_s6, %s393_s0  ;;  %p398_p0 = scmp.lt.s32.totalorder %s43_s6, %s43_s6 }
  0x3f   :  { %p399_p1 = scmp.lt.s32.totalorder %s397_s10, %s393_s0 }
  0x41   :  { %p400_p2 = por %p399_p1, %p398_p0 }
  0x43   :  { %p401_p3 = pnand %p400_p2, %p394_p13 }
  0x45   :  { %404 = shalt.err (!%p401_p3)
}
  0x46   :  { %45 = dma.hbm_to_vmem [thread:$0]  %s572_s2, 16, %s43_s6, [#allocation6]  }
  0x47   :  { %s405_s20 = scalar_lea.hbm %s574_s4, 16 }
  0x48   :  { %p406_p4 = scmp.ne.s32.totalorder %s574_s4, %s405_s20  ;;  %p409_p5 = scmp.lt.u32.totalorder %s405_s20, %s574_s4 }
  0x4a   :  { %p411_p6 = pnand %p409_p5, %p406_p4 }
  0x4c   :  { %414 = shalt.err (!%p411_p6)
}
  0x4d   :  { %s415_s25 = scalar_lea.vmem %s63_s8, 16  ;;  %s419_s26 = scalar_lea.vmem %s63_s8, 32 }
  0x4e   :  { %p416_p7 = scmp.ne.s32.totalorder %s63_s8, %s415_s25  ;;  %p420_p8 = scmp.lt.s32.totalorder %s63_s8, %s63_s8 }
  0x4f   :  { %p421_p9 = scmp.lt.s32.totalorder %s419_s26, %s415_s25 }
  0x51   :  { %p422_p10 = por %p421_p9, %p420_p8 }
  0x53   :  { %p423_p11 = pnand %p422_p10, %p416_p7 }
  0x55   :  { %426 = shalt.err (!%p423_p11)
}
  0x56   :  { %65 = dma.hbm_to_vmem [thread:$0]  %s574_s4, 16, %s63_s8, [#allocation9]  }
  0x57   :  { %449 = dma.done.wait [#allocation3], 128  }
  0x58   :  { %450 = vsyncadd [#allocation3], 4294967168 }
  0x59   :  { %451 = dma.done.wait [#allocation6], 2064  }
  0x5a   :  { %452 = vsyncadd [#allocation6], 4294965232 }
  0x5b   :  { %453 = dma.done.wait [#allocation9], 32  }
  0x5c   :  { %454 = vsyncadd [#allocation9], 4294967264  ;;  %v464_v0 = vmov 0.0|0.0   ;;  %vm465_vm0 = vmmov 0   ;;  %v466_v1 = vmov 0.0   ;;  %v82_v2 = vld [vmem:[#allocation5] sm:$0xff]  ;;  %v195_v48 = vlaneseq }
  0x5d   :  { %280 = vmatprep.subr.bf16.mxu0 %v464_v0  ;;  %277 = vmatprep.mubr.msk.f32.mxu0 %vm465_vm0, %v466_v1  ;;  %v83_v3 = vld [vmem:[#allocation5 + $0x8] sm:$0xff]  ;;  %v84_v5 = vld [vmem:[#allocation5 + $0x10] sm:$0xff]  ;;  %v85_v6 = vld [vmem:[#allocation5 + $0x18] sm:$0xff]  ;;  %s467_s4 = smov [#allocation11]  }
  0x5e   :  { %v281_v4 = vpack.c.bf16 %v83_v3, %v82_v2  ;;  %v284_v7 = vpack.c.bf16 %v85_v6, %v84_v5  ;;  %v86_v8 = vld [vmem:[#allocation5 + $0x20] sm:$0xff]  ;;  %v87_v9 = vld [vmem:[#allocation5 + $0x28] sm:$0xff]  ;;  %v88_v11 = vld [vmem:[#allocation5 + $0x30] sm:$0xff]  ;;  %v196_v49 = vshrl.u32 %v195_v48, 7  ;;  %s215_s28 = sshll.u32 %s467_s4, 4  ;;  %s216_s28 = int_to_ptr.vmem [resolvable:$true] %s215_s28 }
  0x5f   :  { %v287_v10 = vpack.c.bf16 %v87_v9, %v86_v8  ;;  %v89_v12 = vld [vmem:[#allocation5 + $0x38] sm:$0xff]  ;;  %v90_v14 = vld [vmem:[#allocation5 + $0x40] sm:$0xff]  ;;  %v91_v15 = vld [vmem:[#allocation5 + $0x48] sm:$0xff]  ;;  %s427_s3 = scalar_lea.vmem %s216_s28, 128  ;;  %p432_p13 = scmp.lt.s32.totalorder %s216_s28, %s216_s28 }
  0x60   :  { %282 = vmatpush3.bf16.xpose.msra.mxu0 %v281_v4  ;;  %v290_v13 = vpack.c.bf16 %v89_v12, %v88_v11  ;;  %v293_v16 = vpack.c.bf16 %v91_v15, %v90_v14  ;;  %v92_v17 = vld [vmem:[#allocation5 + $0x50] sm:$0xff]  ;;  %v93_v18 = vld [vmem:[#allocation5 + $0x58] sm:$0xff]  ;;  %v94_v20 = vld [vmem:[#allocation5 + $0x60] sm:$0xff]  ;;  %v197_v51 = vsub.s32 0, %v196_v49  ;;  %p428_p12 = scmp.ne.s32.totalorder %s216_s28, %s427_s3  ;;  %p433_p0 = scmp.lt.s32.totalorder %s427_s3, %s427_s3 }
  0x61   :  { %283 = vmatprep.subr.bf16.mxu0 %v464_v0  ;;  %v296_v19 = vpack.c.bf16 %v93_v18, %v92_v17  ;;  %v95_v21 = vld [vmem:[#allocation5 + $0x68] sm:$0xff]  ;;  %v96_v23 = vld [vmem:[#allocation5 + $0x70] sm:$0xff]  ;;  %v97_v24 = vld [vmem:[#allocation5 + $0x78] sm:$0xff] }
  0x62   :  { %v299_v22 = vpack.c.bf16 %v95_v21, %v94_v20  ;;  %v302_v25 = vpack.c.bf16 %v97_v24, %v96_v23  ;;  %v81_v26 = vld [vmem:[#allocation2] sm:$0xff]  ;;  %v226_v27 = vld [vmem:[#allocation7] ss:$0 sm:$0xff]  ;;  %v193_v50 = vld [vmem:[#allocation8] sm:$0x1]  ;;  %p434_p1 = por %p433_p0, %p432_p13 }
  0x63   :  { %v227_v55 = vld [vmem:[#allocation10] ss:$0 sm:$0xff] }
  0x64   :  { %p435_p2 = pnand %p434_p1, %p428_p12 }
  0x68   :  { %285 = vmatpush3.bf16.xpose.msra.mxu0 %v284_v7 }
  0x69   :  { %286 = vmatprep.subr.bf16.mxu0 %v464_v0 }
  0x70   :  { %288 = vmatpush3.bf16.xpose.msra.mxu0 %v287_v10 }
  0x71   :  { %289 = vmatprep.subr.bf16.mxu0 %v464_v0 }
  0x78   :  { %291 = vmatpush3.bf16.xpose.msra.mxu0 %v290_v13 }
  0x79   :  { %292 = vmatprep.subr.bf16.mxu0 %v464_v0 }
  0x80   :  { %294 = vmatpush3.bf16.xpose.msra.mxu0 %v293_v16 }
  0x81   :  { %295 = vmatprep.subr.bf16.mxu0 %v464_v0 }
  0x88   :  { %297 = vmatpush3.bf16.xpose.msra.mxu0 %v296_v19 }
  0x89   :  { %298 = vmatprep.subr.bf16.mxu0 %v464_v0 }
  0x90   :  { %300 = vmatpush3.bf16.xpose.msra.mxu0 %v299_v22 }
  0x91   :  { %301 = vmatprep.subr.bf16.mxu0 %v464_v0 }
  0x98   :  { %303 = vmatpush3.bf16.xpose.msra.mxu0 %v302_v25 }
  0x9f   :  { %278 = vmatmul.mubr.f32.vlgmr.msra.gmra.mrb[0].mxu0 %v81_v26 }
 0x172   :  { %v171_v28 = vpop.f32.mrb[0].mxu0 }
 0x173   :  { %v172_v29 = vadd.f32 %v226_v27, %v171_v28  ;;  %v279_v30 = vpop.f32.mrb[1].mxu0 }
 0x175   :  { %v175_v31 = vrot.slane %v172_v29, 4 }
 0x177   :  { %v176_v32 = vadd.f32 %v175_v31, %v172_v29 }
 0x179   :  { %v177_v33 = vrot.slane %v176_v32, 2 }
 0x17b   :  { %v178_v34 = vadd.f32 %v177_v33, %v176_v32 }
 0x17d   :  { %v179_v35 = vrot.slane %v178_v34, 1 }
 0x17f   :  { %v180_v36 = vadd.f32 %v179_v35, %v178_v34 }
 0x181   :  { %v181_v37 = vmul.f32 0.125, %v180_v36 }
 0x183   :  { %v182_v38 = vsub.f32 %v172_v29, %v181_v37 }
 0x185   :  { %v183_v39 = vmul.f32 %v182_v38, %v182_v38 }
 0x187   :  { %v184_v40 = vrot.slane %v183_v39, 4 }
 0x189   :  { %v185_v41 = vadd.f32 %v184_v40, %v183_v39 }
 0x18b   :  { %v186_v42 = vrot.slane %v185_v41, 2 }
 0x18d   :  { %v187_v43 = vadd.f32 %v186_v42, %v185_v41 }
 0x18f   :  { %v188_v44 = vrot.slane %v187_v43, 1 }
 0x191   :  { %v189_v45 = vadd.f32 %v188_v44, %v187_v43 }
 0x193   :  { %v190_v46 = vmul.f32 0.125, %v189_v45 }
 0x195   :  { %v191_v47 = vadd.f32 1e-05, %v190_v46 }
 0x197   :  { %315 = vrsqrt.f32 %v191_v47 }
 0x1a1   :  { %v316_v52 = vpop.eup %315 }
 0x1a2   :  { %v194_v53 = vmul.f32 %v316_v52, %v193_v50 }
 0x1a4   :  { %v198_v54 = vrot.slane %v194_v53, %v197_v51 }
 0x1a6   :  { %v199_v56 = vmul.f32 %v198_v54, %v182_v38 }
 0x1a8   :  { %v207_v57 = vadd.f32 %v227_v55, %v199_v56 }
 0x1aa   :  { %208 = vst [vmem:[#allocation11] sm:$0xff] %v207_v57 }
 0x1ab   :  { %438 = shalt.err (!%p435_p2)
}
 0x1ac   :  { %s439_s6 = scalar_lea.hbm %s575_s5, 128 }
 0x1ad   :  { %p440_p3 = scmp.ne.s32.totalorder %s575_s5, %s439_s6  ;;  %p443_p4 = scmp.lt.u32.totalorder %s439_s6, %s575_s5 }
 0x1af   :  { %p445_p5 = pnand %p443_p4, %p440_p3 }
 0x1b1   :  { %448 = shalt.err (!%p445_p5)
}
 0x1b2   :  { %218 = dma.vmem_to_hbm [thread:$0]  %s216_s28, 128, %s575_s5, [#allocation4]  }
 0x1b3   :  { %455 = dma.done.wait [#allocation4], 128  }
 0x1b4   :  { %456 = vsyncadd [#allocation4], 4294967168 }
 0x1b5   :  { %222 = vsyncpa [#allocation3], 1 }
 0x1b6   :  { %223 = vsyncpa [#allocation6], 1 }
 0x1b7   :  { %224 = vsyncpa [#allocation9], 1 }
 0x1b8   :  { %225 = vsyncpa [#allocation4], 1 }

</bundles_post_ra>
